<compile_context>
chip_gen: v6e
topology: v6e:2x2x1
jax: 0.10.0
libtpu: 0.0.40
codegen_flags: <defaults>
</compile_context>

<pallas_src>
import functools

import jax
import jax.numpy as jnp
from jax.experimental import pallas as pl
from jax.experimental.pallas import tpu as pltpu


def _contrastive_loss_kernel(o1_ref, o2_ref, t_ref, out_ref, acc_ref, *,
                             margin, eps, batch, block_rows, tiles_per_core):
    c = pl.program_id(0)          # core-parallel split of the batch
    j = pl.program_id(1)          # reduction over this core's batch tiles

    @pl.when(j == 0)
    def _():
        acc_ref[...] = jnp.zeros_like(acc_ref)

    # Widen to f32 in-register; inputs stream from HBM in their native dtype.
    o1 = o1_ref[...].astype(jnp.float32)          # (TB, D)
    o2 = o2_ref[...].astype(jnp.float32)          # (TB, D)
    t = t_ref[...].astype(jnp.float32)            # (TB, 1)

    # Row-validity mask: kills remainder-tile padding and duplicated tiles
    # that were clamped in the index_map.
    tile = c * tiles_per_core + j
    row = tile * block_rows + jax.lax.broadcasted_iota(
        jnp.int32, (block_rows, 1), 0)
    valid = row < batch                           # (TB, 1) bool

    diff = jnp.where(valid, o2 - o1, 0.0)                       # (TB, D)
    distances = jnp.sum(diff * diff, axis=1, keepdims=True)     # (TB, 1) f32
    hinge = jnp.maximum(margin - jnp.sqrt(distances + eps), 0.0)
    losses = 0.5 * (t * distances + (1.0 - t) * hinge * hinge)  # (TB, 1)
    losses = jnp.where(valid, losses, 0.0)

    acc_ref[...] += jnp.sum(losses, keepdims=True)              # (1, 1)

    @pl.when(j == pl.num_programs(1) - 1)
    def _():
        out_ref[...] = acc_ref[...]


def contrastive_loss(output1, output2, target, margin, size_average=True, *,
                     block_rows=None):
    """Pallas TPU version of the PyTorch ContrastiveLoss.forward."""
    assert output1.shape == output2.shape and output1.ndim == 2
    B, D = output1.shape
    t = target.astype(jnp.float32).reshape(B, 1)

    itemsize = jnp.dtype(output1.dtype).itemsize

    # Pick the batch-tile size: 2 inputs x 2 pipeline buffers x TB x D x bytes
    # must stay well inside the smallest default scoped VMEM (16 MiB on v5e).
    if block_rows is None:
        budget = 8 * 1024 * 1024
        tb = budget // max(2 * 2 * D * itemsize, 1)
        tb = min(max(tb, 8), B)
    else:
        tb = min(block_rows, B)
    if tb < B:
        tb = max(8, (tb // 8) * 8)      # (8,128) sublane constraint
    else:
        tb = B                          # full-dim block is always legal

    num_tiles = -(-B // tb)
    nc = 2 if num_tiles >= 2 else 1     # 2-way split for v7x's two TCs
    tiles_per_core = -(-num_tiles // nc)

    def emb_map(c, j):
        # Clamp so every block stays in-bounds; duplicated tiles are masked
        # out inside the kernel via the row-validity mask.
        return (jnp.minimum(c * tiles_per_core + j, num_tiles - 1), 0)

    kernel = functools.partial(
        _contrastive_loss_kernel,
        margin=float(margin),
        eps=1e-9,
        batch=B,
        block_rows=tb,
        tiles_per_core=tiles_per_core,
    )

    cost = pl.CostEstimate(
        flops=3 * B * D + 8 * B,
        transcendentals=B,
        bytes_accessed=2 * B * D * itemsize + 4 * B + 4 * nc,
    )

    partials = pl.pallas_call(
        kernel,
        out_shape=jax.ShapeDtypeStruct((nc, 1), jnp.float32),
        grid_spec=pltpu.PrefetchScalarGridSpec(
            num_scalar_prefetch=0,
            grid=(nc, tiles_per_core),
            in_specs=[
                pl.BlockSpec((tb, D), emb_map),
                pl.BlockSpec((tb, D), emb_map),
                pl.BlockSpec((tb, 1), emb_map),
            ],
            out_specs=pl.BlockSpec((1, 1), lambda c, j: (c, 0)),
            scratch_shapes=[pltpu.VMEM((1, 1), jnp.float32)],
        ),
        compiler_params=pltpu.CompilerParams(
            dimension_semantics=("parallel", "arbitrary"),
            vmem_limit_bytes=32 * 1024 * 1024,
        ),
        cost_estimate=cost,
    )(output1, output2, t)

    total = jnp.sum(partials)
    if size_average:
        total = total / B
    return total


def _reference(output1, output2, target, margin, size_average=True):
    # Pure-JAX reference mirroring the PyTorch forward.
    distances = jnp.sum((output2 - output1) ** 2, axis=1)
    hinge = jnp.maximum(margin - jnp.sqrt(distances + 1e-9), 0.0)
    losses = 0.5 * (target * distances + (1.0 - target) * hinge ** 2)
    return jnp.mean(losses) if size_average else jnp.sum(losses)


if __name__ == "__main__":
    key = jax.random.PRNGKey(0)
    k1, k2, k3, k4, k5, k6 = jax.random.split(key, 6)
    margin = 1.0

    # Primary small case: f32, single tile.
    B, D = 8, 32
    output1 = jax.random.normal(k1, (B, D), dtype=jnp.float32)
    output2 = jax.random.normal(k2, (B, D), dtype=jnp.float32)
    target = jax.random.bernoulli(k3, 0.5, (B,)).astype(jnp.float32)

    loss = contrastive_loss(output1, output2, target, margin, size_average=True)
    loss = jax.block_until_ready(loss)
    ref = _reference(output1, output2, target, margin, size_average=True)
    assert jnp.allclose(loss, ref, rtol=1e-5, atol=1e-6), (loss, ref)

    # Second case: bf16 streaming, non-multiple batch (remainder masking),
    # forced small tiles so the 2-way core split + accumulator path runs.
    B2, D2 = 20, 64
    o1b = jax.random.normal(k4, (B2, D2), dtype=jnp.float32).astype(jnp.bfloat16)
    o2b = jax.random.normal(k5, (B2, D2), dtype=jnp.float32).astype(jnp.bfloat16)
    t2 = jax.random.bernoulli(k6, 0.5, (B2,)).astype(jnp.float32)

    loss2 = contrastive_loss(o1b, o2b, t2, margin, size_average=False,
                             block_rows=8)
    loss2 = jax.block_until_ready(loss2)
    ref2 = _reference(o1b.astype(jnp.float32), o2b.astype(jnp.float32), t2,
                      margin, size_average=False)
    assert jnp.allclose(loss2, ref2, rtol=1e-5, atol=1e-5), (loss2, ref2)

    print("KERNEL_OK")
</pallas_src>

<mosaic_0001>
module attributes {stable_mosaic.version = 11 : i64} {
  func.func @_contrastive_loss_kernel(%arg0: i32, %arg1: i32, %arg2: memref<8x32xf32, #tpu.memory_space<vmem>>, %arg3: memref<8x32xf32, #tpu.memory_space<vmem>>, %arg4: memref<8x1xf32, #tpu.memory_space<vmem>>, %arg5: memref<1x1xf32, #tpu.memory_space<vmem>>, %arg6: memref<1x1xf32, #tpu.memory_space<vmem>>) attributes {dimension_semantics = [#tpu.dimension_semantics<parallel>, #tpu.dimension_semantics<arbitrary>], iteration_bounds = array<i64: 1, 1>, scalar_prefetch = 0 : i64, scratch_operands = 1 : i64, tpu.core_type = #tpu.core_type<tc>, window_params = [{transform_indices = @transform_0, window_bounds = array<i64: 8, 32>}, {transform_indices = @transform_1, window_bounds = array<i64: 8, 32>}, {transform_indices = @transform_2, window_bounds = array<i64: 8, 1>}, {transform_indices = @transform_3, window_bounds = array<i64: 1, 1>}]} {
    %c0_i32 = arith.constant 0 : i32
    %0 = arith.cmpi eq, %arg1, %c0_i32 : i32
    %1 = arith.extui %0 : i1 to i32
    %c0_i32_0 = arith.constant 0 : i32
    %2 = arith.cmpi ne, %1, %c0_i32_0 : i32
    scf.if %2 {
      %cst_21 = arith.constant 0.000000e+00 : f32
      %50 = vector.broadcast %cst_21 : f32 to vector<1x1xf32>
      %c0_22 = arith.constant 0 : index
      %c0_23 = arith.constant 0 : index
      %51 = vector.load %arg6[%c0_22, %c0_23] : memref<1x1xf32, #tpu.memory_space<vmem>>, vector<1x1xf32>
      tpu.vector_store %arg6[%c0_22, %c0_23], %50 {strides = array<i32>} : memref<1x1xf32, #tpu.memory_space<vmem>>, vector<1x1xf32>,
    } else {
    }
    %c0 = arith.constant 0 : index
    %c0_1 = arith.constant 0 : index
    %3 = vector.load %arg2[%c0, %c0_1] : memref<8x32xf32, #tpu.memory_space<vmem>>, vector<8x32xf32>
    %c0_2 = arith.constant 0 : index
    %c0_3 = arith.constant 0 : index
    %4 = vector.load %arg3[%c0_2, %c0_3] : memref<8x32xf32, #tpu.memory_space<vmem>>, vector<8x32xf32>
    %c0_4 = arith.constant 0 : index
    %c0_5 = arith.constant 0 : index
    %5 = vector.load %arg4[%c0_4, %c0_5] : memref<8x1xf32, #tpu.memory_space<vmem>>, vector<8x1xf32>
    %c1_i32 = arith.constant 1 : i32
    %6 = arith.muli %arg0, %c1_i32 : i32
    %7 = arith.addi %6, %arg1 : i32
    %c8_i32 = arith.constant 8 : i32
    %8 = arith.muli %7, %c8_i32 : i32
    %9 = tpu.iota {dimensions = array<i32: 0>} : vector<8x1xi32>
    %10 = vector.broadcast %8 : i32 to vector<8x1xi32>
    %11 = arith.addi %10, %9 : vector<8x1xi32>
    %c8_i32_6 = arith.constant 8 : i32
    %12 = vector.broadcast %c8_i32_6 : i32 to vector<8x1xi32>
    %13 = arith.cmpi slt, %11, %12 : vector<8x1xi32>
    %14 = arith.subf %4, %3 : vector<8x32xf32>
    %cst = arith.constant 0.000000e+00 : f32
    %15 = vector.shape_cast %13 : vector<8x1xi1> to vector<8x1xi1>
    %16 = vector.broadcast %15 : vector<8x1xi1> to vector<8x32xi1>
    %17 = vector.broadcast %cst : f32 to vector<8x32xf32>
    %18 = arith.select %16, %14, %17 : vector<8x32xi1>, vector<8x32xf32>
    %19 = arith.mulf %18, %18 : vector<8x32xf32>
    %cst_7 = arith.constant dense<0.000000e+00> : vector<8xf32>
    %20 = vector.multi_reduction <add>, %19, %cst_7 [1] : vector<8x32xf32> to vector<8xf32>
    %21 = vector.shape_cast %20 : vector<8xf32> to vector<8x1xf32>
    %cst_8 = arith.constant 9.99999971E-10 : f32
    %22 = vector.broadcast %cst_8 : f32 to vector<8x1xf32>
    %23 = arith.addf %21, %22 : vector<8x1xf32>
    %24 = math.sqrt %23 : vector<8x1xf32>
    %cst_9 = arith.constant 1.000000e+00 : f32
    %25 = vector.broadcast %cst_9 : f32 to vector<8x1xf32>
    %26 = arith.subf %25, %24 : vector<8x1xf32>
    %cst_10 = arith.constant 0.000000e+00 : f32
    %27 = vector.broadcast %cst_10 : f32 to vector<8x1xf32>
    %28 = arith.maximumf %26, %27 : vector<8x1xf32>
    %29 = arith.mulf %5, %21 : vector<8x1xf32>
    %cst_11 = arith.constant 1.000000e+00 : f32
    %30 = vector.broadcast %cst_11 : f32 to vector<8x1xf32>
    %31 = arith.subf %30, %5 : vector<8x1xf32>
    %32 = arith.mulf %31, %28 : vector<8x1xf32>
    %33 = arith.mulf %32, %28 : vector<8x1xf32>
    %34 = arith.addf %29, %33 : vector<8x1xf32>
    %cst_12 = arith.constant 5.000000e-01 : f32
    %35 = vector.broadcast %cst_12 : f32 to vector<8x1xf32>
    %36 = arith.mulf %35, %34 : vector<8x1xf32>
    %cst_13 = arith.constant 0.000000e+00 : f32
    %37 = vector.broadcast %cst_13 : f32 to vector<8x1xf32>
    %38 = arith.select %13, %36, %37 : vector<8x1xi1>, vector<8x1xf32>
    %c0_14 = arith.constant 0 : index
    %c0_15 = arith.constant 0 : index
    %39 = vector.load %arg6[%c0_14, %c0_15] : memref<1x1xf32, #tpu.memory_space<vmem>>, vector<1x1xf32>
    %40 = vector.shape_cast %38 : vector<8x1xf32> to vector<1x8x1xf32>
    %cst_16 = arith.constant dense<0.000000e+00> : vector<1xf32>
    %41 = vector.multi_reduction <add>, %40, %cst_16 [1, 2] : vector<1x8x1xf32> to vector<1xf32>
    %42 = vector.shape_cast %41 : vector<1xf32> to vector<1x1x1xf32>
    %43 = vector.extract %42[0, 0, 0] : f32 from vector<1x1x1xf32>
    %44 = vector.broadcast %43 : f32 to vector<1x1xf32>
    %45 = arith.addf %39, %44 : vector<1x1xf32>
    %c0_17 = arith.constant 0 : index
    %c0_18 = arith.constant 0 : index
    %46 = vector.load %arg6[%c0_17, %c0_18] : memref<1x1xf32, #tpu.memory_space<vmem>>, vector<1x1xf32>
    tpu.vector_store %arg6[%c0_17, %c0_18], %45 {strides = array<i32>} : memref<1x1xf32, #tpu.memory_space<vmem>>, vector<1x1xf32>,
    %c0_i32_19 = arith.constant 0 : i32
    %47 = arith.cmpi eq, %arg1, %c0_i32_19 : i32
    %48 = arith.extui %47 : i1 to i32
    %c0_i32_20 = arith.constant 0 : i32
    %49 = arith.cmpi ne, %48, %c0_i32_20 : i32
    scf.if %49 {
      %c0_21 = arith.constant 0 : index
      %c0_22 = arith.constant 0 : index
      %50 = vector.load %arg6[%c0_21, %c0_22] : memref<1x1xf32, #tpu.memory_space<vmem>>, vector<1x1xf32>
      %c0_23 = arith.constant 0 : index
      %c0_24 = arith.constant 0 : index
      %51 = vector.load %arg5[%c0_23, %c0_24] : memref<1x1xf32, #tpu.memory_space<vmem>>, vector<1x1xf32>
      tpu.vector_store %arg5[%c0_23, %c0_24], %50 {strides = array<i32>} : memref<1x1xf32, #tpu.memory_space<vmem>>, vector<1x1xf32>,
    } else {
    }
    return
  }
  func.func @transform_0(%arg0: i32, %arg1: i32) -> (i32, i32) {
    %c1_i32 = arith.constant 1 : i32
    %0 = arith.muli %arg0, %c1_i32 : i32
    %1 = arith.addi %0, %arg1 : i32
    %c0_i32 = arith.constant 0 : i32
    %2 = arith.minsi %1, %c0_i32 : i32
    %c0_i32_0 = arith.constant 0 : i32
    %c0_i32_1 = arith.constant 0 : i32
    return %2, %c0_i32_0 : i32, i32
  }
  func.func @transform_1(%arg0: i32, %arg1: i32) -> (i32, i32) {
    %c1_i32 = arith.constant 1 : i32
    %0 = arith.muli %arg0, %c1_i32 : i32
    %1 = arith.addi %0, %arg1 : i32
    %c0_i32 = arith.constant 0 : i32
    %2 = arith.minsi %1, %c0_i32 : i32
    %c0_i32_0 = arith.constant 0 : i32
    %c0_i32_1 = arith.constant 0 : i32
    return %2, %c0_i32_0 : i32, i32
  }
  func.func @transform_2(%arg0: i32, %arg1: i32) -> (i32, i32) {
    %c1_i32 = arith.constant 1 : i32
    %0 = arith.muli %arg0, %c1_i32 : i32
    %1 = arith.addi %0, %arg1 : i32
    %c0_i32 = arith.constant 0 : i32
    %2 = arith.minsi %1, %c0_i32 : i32
    %c0_i32_0 = arith.constant 0 : i32
    %c0_i32_1 = arith.constant 0 : i32
    return %2, %c0_i32_0 : i32, i32
  }
  func.func @transform_3(%arg0: i32, %arg1: i32) -> (i32, i32) {
    %c0_i32 = arith.constant 0 : i32
    %c0_i32_0 = arith.constant 0 : i32
    return %arg0, %c0_i32 : i32, i32
  }
}

</mosaic_0001>

<bundles_post_ra>
// kernel: tpu_custom_call.1
= control target key start
LH: loop header
LB: loop body
LE: loop exit
PB: predicated region body
PF: predicated region fallthrough
CT: control target
= control target key end

     0   :  { %8 = vsyncpa [#allocation4], 0  ;;  %s270_s0 = inlined_call_operand.vmem [shape: f32[8,32], index: 0, kind: input, shape index: {}]   ;;  %s271_s1 = inlined_call_operand.hbm [shape: f32[8,32], index: 1, kind: input, shape index: {}]   ;;  %s272_s2 = inlined_call_operand.vmem [shape: f32[8,1], index: 2, kind: input, shape index: {}]   ;;  %s273_s3 = inlined_call_operand.hbm [shape: f32[1,1], index: 3, kind: output, shape index: {}]  }
   0x1   :  { %9 = vsyncpa [#allocation5], 0  ;;  %s232_s12 = smov [#allocation3]  }
   0x2   :  { %s33_s13 = sshll.u32 %s232_s12, 4  ;;  %s34_s13 = int_to_ptr.vmem [resolvable:$true] %s33_s13 }
   0x3   :  { %s196_s14 = scalar_lea.vmem %s34_s13, 128  ;;  %p201_p1 = scmp.lt.s32.totalorder %s34_s13, %s34_s13 }
   0x4   :  { %p197_p0 = scmp.ne.s32.totalorder %s34_s13, %s196_s14  ;;  %p202_p2 = scmp.lt.s32.totalorder %s196_s14, %s196_s14 }
   0x6   :  { %p203_p3 = por %p202_p2, %p201_p1 }
   0x8   :  { %p204_p4 = pnand %p203_p3, %p197_p0 }
   0xa   :  { %207 = shalt.err (!%p204_p4)
}
   0xb   :  { %36 = dma.hbm_to_vmem [thread:$0]  %s271_s1, 128, %s34_s13, [#allocation4]  }
   0xc   :  { %228 = dma.done.wait [#allocation4], 128  }
   0xd   :  { %229 = vsyncadd [#allocation4], 4294967168  ;;  %v95_v0 = vld [vmem:[%s270_s0] sm:$0xff]  ;;  %vm110_vm0 = vcmask 261120   ;;  %vm132_vm3 = vcmask 7168   ;;  %vm93_vm4 = vcmask 0  }
   0xe   :  { %v96_v1 = vld [vmem:[#allocation3] sm:$0xff]  ;;  %v233_v22 = vmov 0.0  }
   0xf   :  { %v105_v2 = vsub.f32 %v96_v1, %v95_v0  ;;  %v97_v11 = vld [vmem:[%s272_s2] sm:$0xff]  ;;  %94 = vst.msk [vmem:[#allocation2] sm:$0x1] %vm93_vm4, %v233_v22  ;;  %s234_s2 = smov [#allocation6]  }
  0x10   :  { %v125_v13 = vsub.f32 1.0, %v97_v11  ;;  %s158_s20 = sshll.u32 %s234_s2, 4  ;;  %s159_s20 = int_to_ptr.vmem [resolvable:$true] %s158_s20 }
  0x11   :  { %v109_v3 = vmul.f32 %v105_v2, %v105_v2  ;;  %s208_s21 = scalar_lea.vmem %s159_s20, 16  ;;  %s212_s22 = scalar_lea.vmem %s159_s20, 32 }
  0x12   :  { %p209_p5 = scmp.ne.s32.totalorder %s159_s20, %s208_s21  ;;  %p213_p6 = scmp.lt.s32.totalorder %s159_s20, %s159_s20 }
  0x13   :  { %v111_v4 = vsel %vm110_vm0, %v109_v3, 0.0  ;;  %p214_p7 = scmp.lt.s32.totalorder %s212_s22, %s208_s21 }
  0x14   :  { %112 = vadd.xlane.f32.xlu0 %v111_v4 }
  0x15   :  { %p215_p8 = por %p214_p7, %p213_p6 }
  0x16   :  { %v131_v30 = vld [vmem:[#allocation2] sm:$0x1] }
  0x17   :  { %p216_p9 = pnand %p215_p8, %p209_p5 }
  0x9d   :  { %v113_v5 = vpop.xlane.xlu0 %112 }
  0x9e   :  { %v114_v6 = vadd.f32 1e-09, %v113_v5  ;;  %v124_v17 = vmul.f32 %v113_v5, %v97_v11 }
  0xa0   :  { %186 = vrsqrt.f32 %v114_v6  ;;  %vm117_vm1 = vcmp.eq.f32.partialorder %v114_v6, inf  ;;  %v120_v9 = vand.u32 2147483648, %v114_v6  ;;  %vm119_vm2 = vcmp.eq.f32.partialorder %v114_v6, 0.0 }
  0xad   :  { %v187_v7 = vpop.eup %186 }
  0xae   :  { %v116_v8 = vmul.f32 %v187_v7, %v114_v6 }
  0xb0   :  { %v118_v10 = vsel %vm117_vm1, %v114_v6, %v116_v8 }
  0xb1   :  { %v121_v12 = vsel %vm119_vm2, %v120_v9, %v118_v10 }
  0xb2   :  { %v122_v14 = vsub.f32 1.0, %v121_v12 }
  0xb4   :  { %v123_v15 = vmax.f32 %v122_v14, 0.0 }
  0xb6   :  { %v126_v16 = vmul.f32 %v125_v13, %v123_v15 }
  0xb8   :  { %v127_v18 = vmul.f32 %v126_v16, %v123_v15 }
  0xba   :  { %v128_v19 = vadd.f32 %v127_v18, %v124_v17 }
  0xbc   :  { %v129_v20 = vmul.f32 0.5, %v128_v19 }
  0xbe   :  { %v133_v21 = vsel %vm132_vm3, %v129_v20, 0.0 }
  0xbf   :  { %134 = vadd.xlane.f32.xlu0 %v133_v21 }
 0x148   :  { %v135_v23 = vpop.xlane.xlu0 %134 }
 0x149   :  { %v136_v24 = vrot.slane %v135_v23, 4 }
 0x14b   :  { %v137_v25 = vadd.f32 %v136_v24, %v135_v23 }
 0x14d   :  { %v138_v26 = vrot.slane %v137_v25, 2 }
 0x14f   :  { %v139_v27 = vadd.f32 %v138_v26, %v137_v25 }
 0x151   :  { %v140_v28 = vrot.slane %v139_v27, 1 }
 0x153   :  { %v141_v29 = vadd.f32 %v140_v28, %v139_v27 }
 0x155   :  { %181 = vpush %v141_v29 }
 0x186   :  { %s182_s0 = spop %181 }
 0x187   :  { %v143_v31 = vstv %s182_s0 }
 0x188   :  { %v144_v32 = vadd.f32 %v143_v31, %v131_v30 }
 0x18a   :  { %146 = vst.msk [vmem:[#allocation2] sm:$0x1] %vm93_vm4, %v144_v32 }
 0x191   :  { %v150_v33 = vld [vmem:[#allocation2] sm:$0x1] }
 0x192   :  { %151 = vst.msk [vmem:[#allocation6] sm:$0x1] %vm93_vm4, %v150_v33 }
 0x193   :  { %219 = shalt.err (!%p216_p9)
}
 0x194   :  { %161 = dma.vmem_to_hbm [thread:$0]  %s159_s20, 16, %s273_s3, [#allocation5]  }
 0x195   :  { %230 = dma.done.wait [#allocation5], 16  }
 0x196   :  { %231 = vsyncadd [#allocation5], 4294967280 }
 0x197   :  { %165 = vsyncpa [#allocation4], 1 }
 0x198   :  { %166 = vsyncpa [#allocation5], 1 }

</bundles_post_ra>
